<compile_context>
chip_gen: v6e
topology: v6e:2x2x1
jax: 0.10.0
libtpu: 0.0.40
codegen_flags: <defaults>
</compile_context>

<pallas_src>
import jax
import jax.numpy as jnp
from jax.experimental import pallas as pl
from jax.experimental.pallas import tpu as pltpu

# ----------------------- small synthetic configuration -----------------------
C, IMG_H, IMG_W = 3, 16, 16                       # image NCHW
PATCH = 4
N_PATCH = (IMG_H // PATCH) * (IMG_W // PATCH)     # 16 image tokens
PATCH_FEAT = C * PATCH * PATCH                    # 48 features per patch
HIDDEN = 32
FFN = 64
VOCAB = 128
LANES = 128                                       # lane-dense working width
SEG0_LEN = 4                                      # prompt segment before <ImageHere>
SEG1_LEN = 8                                      # prompt segment after image (goal+target)
SEQ = SEG0_LEN + N_PATCH + SEG1_LEN               # 28 real tokens
SEQ_PAD = 32                                      # padded to a multiple of 8 sublanes
PAD_ROWS = SEQ_PAD - SEQ
IGNORE = -200                                     # CrossEntropyLoss ignore_index
TRAIN_NUM = 3                                     # number of stored conversations
# static ignore pattern of the shifted labels -> compile-time valid-token count
N_VALID = (SEG0_LEN - 1) + SEG1_LEN               # = 11

# packed bf16 weight slab row offsets (four [128,128] blocks)
W_VIS_OFF = 0 * LANES
W13_OFF = 1 * LANES
W2_OFF = 2 * LANES
WLM_OFF = 3 * LANES
W_ROWS = 4 * LANES


# ------------------------------ fused Pallas kernel ---------------------------
def _minigpt_fused_kernel(k_ids_ref, patches_ref, ktab_ref, w_ref, aux_ref, out_ref):
    # patches_ref: [SEQ_PAD, 128] bf16  image patch feats at rows SEG0..SEG0+NP, cols 0:48
    # ktab_ref:    [2*SEQ_PAD, 128] f32 rows 0:32 text embeddings, rows 32:64 label one-hot
    # w_ref:       [512, 128] bf16     packed (w_vis | w13 | w2 | w_lm) slab
    # aux_ref:     [2, 128] f32        row 0 vision bias, row 1 RMSNorm gamma
    del k_ids_ref  # consumed by the index_maps (scalar prefetch)

    aux = aux_ref[...]                 # [2,128] f32
    b_vis = aux[0:1, :]                # [1,128]
    rms_g = aux[1:2, :]                # [1,128]

    row = jax.lax.broadcasted_iota(jnp.int32, (SEQ_PAD, 1), 0)
    is_img = jnp.logical_and(row >= SEG0_LEN,
                             row < SEG0_LEN + N_PATCH).astype(jnp.float32)

    # ---- encode_img: vision patch projection (bf16 MXU, f32 acc); bias only on image rows
    img = jnp.dot(patches_ref[...], w_ref[W_VIS_OFF:W_VIS_OFF + LANES, :],
                  preferred_element_type=jnp.float32)            # [32,128]
    # ---- get_context_emb: text rows + projected image rows, assembled in registers
    x = ktab_ref[0:SEQ_PAD, :] + img + is_img * b_vis            # [32,128] f32

    # ---- llama block stand-in: SwiGLU MLP (packed gate|up) + residual
    h13 = jnp.dot(x.astype(jnp.bfloat16), w_ref[W13_OFF:W13_OFF + LANES, :],
                  preferred_element_type=jnp.float32)            # [32, gate|up]
    up_aligned = pltpu.roll(h13, shift=FFN, axis=1)              # half-swap on the XLU
    h = jax.nn.silu(h13) * up_aligned                            # cols 64:128 = garbage
    x = x + jnp.dot(h.astype(jnp.bfloat16), w_ref[W2_OFF:W2_OFF + LANES, :],
                    preferred_element_type=jnp.float32)          # zero w2 rows kill garbage

    # ---- RMSNorm (f32); hidden lives in cols 0:HIDDEN, pad cols are exactly zero
    var = jnp.sum(x * x, axis=-1, keepdims=True) * (1.0 / HIDDEN)
    x = x * jax.lax.rsqrt(var + 1e-6) * rms_g

    # ---- LM head -> logits [32, VOCAB=128]
    logits = jnp.dot(x.astype(jnp.bfloat16), w_ref[WLM_OFF:WLM_OFF + LANES, :],
                     preferred_element_type=jnp.float32)

    # ---- shifted CE, ignore_index=-200, mean over the N_VALID tokens, negated
    onehot = ktab_ref[SEQ_PAD:2 * SEQ_PAD, :]                    # all-zero on ignore rows
    valid = jnp.logical_or(
        row <= SEG0_LEN - 2,
        jnp.logical_and(row >= SEG0_LEN + N_PATCH - 1, row <= SEQ - 2),
    ).astype(jnp.float32)                                        # static ignore pattern
    m = jnp.max(logits, axis=-1, keepdims=True)
    lse = m + jnp.log(jnp.sum(jnp.exp(logits - m), axis=-1, keepdims=True))
    picked = jnp.sum(logits * onehot, axis=-1, keepdims=True)    # 0 on ignore rows
    loss = jnp.sum(lse * valid - picked, keepdims=True) * (1.0 / N_VALID)
    out_ref[...] = -loss                                         # module returns -loss


def fused_forward_call(params, k_ids, patches_pad):
    """k_ids: [B] i32 conversation index, patches_pad: [B, SEQ_PAD, 128] bf16 -> [B,1] -loss."""
    b = patches_pad.shape[0]
    return pl.pallas_call(
        _minigpt_fused_kernel,
        out_shape=jax.ShapeDtypeStruct((b, 1), jnp.float32),
        grid_spec=pltpu.PrefetchScalarGridSpec(
            num_scalar_prefetch=1,                               # k_ids -> SMEM
            grid=(b,),
            in_specs=[
                pl.BlockSpec((None, SEQ_PAD, LANES), lambda i, kr: (i, 0, 0)),       # patches
                pl.BlockSpec((None, 2 * SEQ_PAD, LANES), lambda i, kr: (kr[i], 0, 0)),  # per-k table
                pl.BlockSpec((W_ROWS, LANES), lambda i, kr: (0, 0)),                 # weight slab
                pl.BlockSpec((2, LANES), lambda i, kr: (0, 0)),                      # bias + gamma
            ],
            out_specs=pl.BlockSpec((1, 1), lambda i, kr: (i, 0)),
        ),
        compiler_params=pltpu.CompilerParams(
            dimension_semantics=("parallel",)),   # shards a real batch across TCs on v7x
    )(k_ids, patches_pad, params["ktab"], params["w_slab"], params["aux"])


# ------------------------------ init-time machinery ---------------------------
def init_params(key):
    ks = jax.random.split(key, 10)
    s = 0.05
    embed = s * jax.random.normal(ks[0], (VOCAB, HIDDEN), jnp.float32)
    w_vis = s * jax.random.normal(ks[1], (PATCH_FEAT, HIDDEN), jnp.float32)
    b_vis = s * jax.random.normal(ks[2], (HIDDEN,), jnp.float32)
    w1 = s * jax.random.normal(ks[3], (HIDDEN, FFN), jnp.float32)
    w3 = s * jax.random.normal(ks[4], (HIDDEN, FFN), jnp.float32)
    w2 = s * jax.random.normal(ks[5], (FFN, HIDDEN), jnp.float32)
    rms_g = jnp.ones((HIDDEN,), jnp.float32)
    w_lm = s * jax.random.normal(ks[6], (HIDDEN, VOCAB), jnp.float32)
    # per-conversation prompt token ids (stand-in for tokenizer output)
    seg0_ids = jax.random.randint(ks[7], (SEG0_LEN,), 0, VOCAB, jnp.int32)
    seg1_ids = jax.random.randint(ks[8], (TRAIN_NUM, SEG1_LEN), 0, VOCAB, jnp.int32)

    # ---- packed, lane-dense bf16 weight slab: four [128,128] blocks ----
    def pad_block(w):
        return jnp.zeros((LANES, LANES), jnp.float32).at[:w.shape[0], :w.shape[1]].set(w)

    w13 = jnp.concatenate([w1, w3], axis=1)                      # [HIDDEN, 2*FFN]
    w_slab = jnp.concatenate(
        [pad_block(w_vis), pad_block(w13), pad_block(w2), pad_block(w_lm)],
        axis=0).astype(jnp.bfloat16)                             # [512, 128]

    aux = jnp.zeros((2, LANES), jnp.float32)
    aux = aux.at[0, :HIDDEN].set(b_vis).at[1, :HIDDEN].set(rms_g)

    # ---- per-conversation table (text embeddings | shifted-label one-hot), built once ----
    def build_k(seg1_k):
        toks = jnp.concatenate(
            [seg0_ids, jnp.full((N_PATCH,), IGNORE, jnp.int32), seg1_k])       # [SEQ]
        text = jnp.zeros((SEQ_PAD, LANES), jnp.float32)
        text = text.at[:SEG0_LEN, :HIDDEN].set(embed[seg0_ids])
        text = text.at[SEG0_LEN + N_PATCH:SEQ, :HIDDEN].set(embed[seg1_k])
        shift = jnp.concatenate(
            [toks[1:], jnp.full((1 + PAD_ROWS,), IGNORE, jnp.int32)])          # [SEQ_PAD]
        onehot = jax.nn.one_hot(shift, VOCAB, dtype=jnp.float32)  # IGNORE rows -> all zero
        return jnp.concatenate([text, onehot], axis=0)            # [2*SEQ_PAD, 128]

    ktab = jax.vmap(build_k)(seg1_ids)                            # [TRAIN_NUM, 64, 128]

    return {"w_slab": w_slab, "aux": aux, "ktab": ktab,
            "embed": embed, "seg0_ids": seg0_ids, "seg1_ids": seg1_ids}


# ------------------------------ JAX glue / wrapper ----------------------------
def _patchify_pad(images):
    """NCHW images -> [B, SEQ_PAD, 128] bf16 with patch feats at rows SEG0..SEG0+NP, cols 0:48."""
    b = images.shape[0]
    p = images.reshape(b, C, IMG_H // PATCH, PATCH, IMG_W // PATCH, PATCH)
    p = p.transpose(0, 2, 4, 1, 3, 5).reshape(b, N_PATCH, PATCH_FEAT)
    out = jnp.zeros((b, SEQ_PAD, LANES), jnp.bfloat16)
    return out.at[:, SEG0_LEN:SEG0_LEN + N_PATCH, :PATCH_FEAT].set(p.astype(jnp.bfloat16))


@jax.jit
def _forward_jit(params, images, k_ids):
    patches_pad = _patchify_pad(images)                          # only per-call glue op
    out = fused_forward_call(params, k_ids, patches_pad)         # [B,1] already = -loss
    return out[:, 0]


def minigpt_forward(params, inp):
    """Mirrors MiniGPT.forward: inp = (images [1,C,H,W] NCHW, k). Returns -loss."""
    images, k = inp
    k_ids = jnp.asarray([k], jnp.int32)
    return _forward_jit(params, images, k_ids)[0]


# ------------------------- plain-JAX mirror (for checking) --------------------
def _reference_neg_loss(params, patches_pad_1, ktab_k):
    w = params["w_slab"]
    aux = params["aux"]
    row = jnp.arange(SEQ_PAD)[:, None]
    is_img = ((row >= SEG0_LEN) & (row < SEG0_LEN + N_PATCH)).astype(jnp.float32)
    img = jnp.dot(patches_pad_1, w[W_VIS_OFF:W_VIS_OFF + LANES],
                  preferred_element_type=jnp.float32)
    x = ktab_k[:SEQ_PAD] + img + is_img * aux[0:1]
    h13 = jnp.dot(x.astype(jnp.bfloat16), w[W13_OFF:W13_OFF + LANES],
                  preferred_element_type=jnp.float32)
    h = jax.nn.silu(h13) * jnp.roll(h13, FFN, axis=1)
    x = x + jnp.dot(h.astype(jnp.bfloat16), w[W2_OFF:W2_OFF + LANES],
                    preferred_element_type=jnp.float32)
    var = jnp.sum(x * x, axis=-1, keepdims=True) / HIDDEN
    x = x * jax.lax.rsqrt(var + 1e-6) * aux[1:2]
    logits = jnp.dot(x.astype(jnp.bfloat16), w[WLM_OFF:WLM_OFF + LANES],
                     preferred_element_type=jnp.float32)
    onehot = ktab_k[SEQ_PAD:]
    valid = ((row <= SEG0_LEN - 2) &
             jnp.ones_like(row, bool) | ((row >= SEG0_LEN + N_PATCH - 1) & (row <= SEQ - 2))
             ).astype(jnp.float32)
    m = jnp.max(logits, axis=-1, keepdims=True)
    lse = m + jnp.log(jnp.sum(jnp.exp(logits - m), axis=-1, keepdims=True))
    picked = jnp.sum(logits * onehot, axis=-1, keepdims=True)
    return -(jnp.sum(lse * valid - picked) / N_VALID)


if __name__ == "__main__":
    key = jax.random.PRNGKey(0)
    pkey, ikey = jax.random.split(key)
    params = init_params(pkey)

    images = jax.random.normal(ikey, (1, C, IMG_H, IMG_W), jnp.float32)  # NCHW
    k = 0

    neg_loss = minigpt_forward(params, (images, k))
    neg_loss = jax.block_until_ready(neg_loss)
    assert jnp.isfinite(neg_loss), "loss is not finite"

    # light correctness check against the plain-JAX mirror of the same math
    ref = _reference_neg_loss(params, _patchify_pad(images)[0], params["ktab"][k])
    ref = jax.block_until_ready(ref)
    assert jnp.allclose(neg_loss, ref, rtol=3e-2, atol=3e-2), (neg_loss, ref)

    print("KERNEL_OK")
</pallas_src>

<mosaic_0001>
module attributes {stable_mosaic.version = 11 : i64} {
  func.func @_minigpt_fused_kernel(%arg0: i32, %arg1: memref<1xi32, #tpu.memory_space<smem>>, %arg2: memref<1x32x128xbf16, #tpu.memory_space<vmem>>, %arg3: memref<1x64x128xf32, #tpu.memory_space<vmem>>, %arg4: memref<512x128xbf16, #tpu.memory_space<vmem>>, %arg5: memref<2x128xf32, #tpu.memory_space<vmem>>, %arg6: memref<1x1xf32, #tpu.memory_space<vmem>>) attributes {dimension_semantics = [#tpu.dimension_semantics<parallel>], iteration_bounds = array<i64: 1>, scalar_prefetch = 1 : i64, scratch_operands = 0 : i64, tpu.core_type = #tpu.core_type<tc>, window_params = [{transform_indices = @transform_0, window_bounds = array<i64: 1, 32, 128>}, {transform_indices = @transform_1, window_bounds = array<i64: 1, 64, 128>}, {pipeline_mode = #tpu.pipeline_mode<synchronous>, transform_indices = @transform_2, window_bounds = array<i64: 512, 128>}, {pipeline_mode = #tpu.pipeline_mode<synchronous>, transform_indices = @transform_3, window_bounds = array<i64: 2, 128>}, {transform_indices = @transform_4, window_bounds = array<i64: 1, 1>}]} {
    %c0 = arith.constant 0 : index
    %c0_0 = arith.constant 0 : index
    %0 = vector.load %arg5[%c0, %c0_0] : memref<2x128xf32, #tpu.memory_space<vmem>>, vector<2x128xf32>
    %1 = vector.extract_strided_slice %0 {offsets = [0, 0], sizes = [1, 128], strides = [1, 1]} : vector<2x128xf32> to vector<1x128xf32>
    %2 = vector.extract_strided_slice %0 {offsets = [1, 0], sizes = [1, 128], strides = [1, 1]} : vector<2x128xf32> to vector<1x128xf32>
    %3 = tpu.iota {dimensions = array<i32: 0>} : vector<32x1xi32>
    %c4_i32 = arith.constant 4 : i32
    %4 = vector.broadcast %c4_i32 : i32 to vector<32x1xi32>
    %5 = arith.cmpi sge, %3, %4 : vector<32x1xi32>
    %c20_i32 = arith.constant 20 : i32
    %6 = vector.broadcast %c20_i32 : i32 to vector<32x1xi32>
    %7 = arith.cmpi slt, %3, %6 : vector<32x1xi32>
    %8 = arith.andi %5, %7 : vector<32x1xi1>
    %9 = arith.extui %8 : vector<32x1xi1> to vector<32x1xi32>
    %10 = arith.sitofp %9 : vector<32x1xi32> to vector<32x1xf32>
    %c0_1 = arith.constant 0 : index
    %c0_2 = arith.constant 0 : index
    %c0_3 = arith.constant 0 : index
    %11 = vector.load %arg2[%c0_1, %c0_2, %c0_3] : memref<1x32x128xbf16, #tpu.memory_space<vmem>>, vector<1x32x128xbf16>
    %12 = vector.shape_cast %11 : vector<1x32x128xbf16> to vector<32x128xbf16>
    %c0_4 = arith.constant 0 : index
    %c0_5 = arith.constant 0 : index
    %13 = vector.load %arg4[%c0_4, %c0_5] : memref<512x128xbf16, #tpu.memory_space<vmem>>, vector<128x128xbf16>
    %cst = arith.constant dense<0.000000e+00> : vector<32x128xf32>
    %14 = tpu.matmul %12, %13, %cst {dimension_numbers = #tpu.dot_dimension_numbers<[1], [0], [0], [1], [0, 0, 1, 1], [], []>} : vector<32x128xbf16>, vector<128x128xbf16>, vector<32x128xf32> -> vector<32x128xf32>
    %c0_6 = arith.constant 0 : index
    %c0_7 = arith.constant 0 : index
    %c0_8 = arith.constant 0 : index
    %15 = vector.load %arg3[%c0_6, %c0_7, %c0_8] : memref<1x64x128xf32, #tpu.memory_space<vmem>>, vector<1x32x128xf32>
    %16 = vector.shape_cast %15 : vector<1x32x128xf32> to vector<32x128xf32>
    %17 = arith.addf %16, %14 : vector<32x128xf32>
    %18 = vector.broadcast %10 : vector<32x1xf32> to vector<32x128xf32>
    %19 = vector.broadcast %1 : vector<1x128xf32> to vector<32x128xf32>
    %20 = arith.mulf %18, %19 : vector<32x128xf32>
    %21 = arith.addf %17, %20 : vector<32x128xf32>
    %22 = arith.truncf %21 : vector<32x128xf32> to vector<32x128xbf16>
    %c128 = arith.constant 128 : index
    %c0_9 = arith.constant 0 : index
    %23 = vector.load %arg4[%c128, %c0_9] : memref<512x128xbf16, #tpu.memory_space<vmem>>, vector<128x128xbf16>
    %cst_10 = arith.constant dense<0.000000e+00> : vector<32x128xf32>
    %24 = tpu.matmul %22, %23, %cst_10 {dimension_numbers = #tpu.dot_dimension_numbers<[1], [0], [0], [1], [0, 0, 1, 1], [], []>} : vector<32x128xbf16>, vector<128x128xbf16>, vector<32x128xf32> -> vector<32x128xf32>
    %c64_i32 = arith.constant 64 : i32
    %25 = tpu.dynamic_rotate %24 by %c64_i32 dim 1 : vector<32x128xf32>, i32 -> vector<32x128xf32>
    %26 = arith.negf %24 : vector<32x128xf32>
    %27 = math.exp %26 : vector<32x128xf32>
    %cst_11 = arith.constant 1.000000e+00 : f32
    %28 = vector.broadcast %cst_11 : f32 to vector<32x128xf32>
    %29 = arith.addf %28, %27 : vector<32x128xf32>
    %30 = arith.divf %28, %29 : vector<32x128xf32>
    %31 = arith.mulf %24, %30 : vector<32x128xf32>
    %32 = arith.mulf %31, %25 : vector<32x128xf32>
    %33 = arith.truncf %32 : vector<32x128xf32> to vector<32x128xbf16>
    %c256 = arith.constant 256 : index
    %c0_12 = arith.constant 0 : index
    %34 = vector.load %arg4[%c256, %c0_12] : memref<512x128xbf16, #tpu.memory_space<vmem>>, vector<128x128xbf16>
    %cst_13 = arith.constant dense<0.000000e+00> : vector<32x128xf32>
    %35 = tpu.matmul %33, %34, %cst_13 {dimension_numbers = #tpu.dot_dimension_numbers<[1], [0], [0], [1], [0, 0, 1, 1], [], []>} : vector<32x128xbf16>, vector<128x128xbf16>, vector<32x128xf32> -> vector<32x128xf32>
    %36 = arith.addf %21, %35 : vector<32x128xf32>
    %37 = arith.mulf %36, %36 : vector<32x128xf32>
    %cst_14 = arith.constant dense<0.000000e+00> : vector<32xf32>
    %38 = vector.multi_reduction <add>, %37, %cst_14 [1] : vector<32x128xf32> to vector<32xf32>
    %39 = vector.shape_cast %38 : vector<32xf32> to vector<32x1xf32>
    %cst_15 = arith.constant 3.125000e-02 : f32
    %40 = vector.broadcast %cst_15 : f32 to vector<32x1xf32>
    %41 = arith.mulf %39, %40 : vector<32x1xf32>
    %cst_16 = arith.constant 9.99999997E-7 : f32
    %42 = vector.broadcast %cst_16 : f32 to vector<32x1xf32>
    %43 = arith.addf %41, %42 : vector<32x1xf32>
    %44 = math.rsqrt %43 : vector<32x1xf32>
    %45 = vector.broadcast %44 : vector<32x1xf32> to vector<32x128xf32>
    %46 = arith.mulf %36, %45 : vector<32x128xf32>
    %47 = vector.broadcast %2 : vector<1x128xf32> to vector<32x128xf32>
    %48 = arith.mulf %46, %47 : vector<32x128xf32>
    %49 = arith.truncf %48 : vector<32x128xf32> to vector<32x128xbf16>
    %c384 = arith.constant 384 : index
    %c0_17 = arith.constant 0 : index
    %50 = vector.load %arg4[%c384, %c0_17] : memref<512x128xbf16, #tpu.memory_space<vmem>>, vector<128x128xbf16>
    %cst_18 = arith.constant dense<0.000000e+00> : vector<32x128xf32>
    %51 = tpu.matmul %49, %50, %cst_18 {dimension_numbers = #tpu.dot_dimension_numbers<[1], [0], [0], [1], [0, 0, 1, 1], [], []>} : vector<32x128xbf16>, vector<128x128xbf16>, vector<32x128xf32> -> vector<32x128xf32>
    %c0_19 = arith.constant 0 : index
    %c32 = arith.constant 32 : index
    %c0_20 = arith.constant 0 : index
    %52 = vector.load %arg3[%c0_19, %c32, %c0_20] : memref<1x64x128xf32, #tpu.memory_space<vmem>>, vector<1x32x128xf32>
    %53 = vector.shape_cast %52 : vector<1x32x128xf32> to vector<32x128xf32>
    %c2_i32 = arith.constant 2 : i32
    %54 = vector.broadcast %c2_i32 : i32 to vector<32x1xi32>
    %55 = arith.cmpi sle, %3, %54 : vector<32x1xi32>
    %c19_i32 = arith.constant 19 : i32
    %56 = vector.broadcast %c19_i32 : i32 to vector<32x1xi32>
    %57 = arith.cmpi sge, %3, %56 : vector<32x1xi32>
    %c26_i32 = arith.constant 26 : i32
    %58 = vector.broadcast %c26_i32 : i32 to vector<32x1xi32>
    %59 = arith.cmpi sle, %3, %58 : vector<32x1xi32>
    %60 = arith.andi %57, %59 : vector<32x1xi1>
    %61 = arith.ori %55, %60 : vector<32x1xi1>
    %62 = arith.extui %61 : vector<32x1xi1> to vector<32x1xi32>
    %63 = arith.sitofp %62 : vector<32x1xi32> to vector<32x1xf32>
    %cst_21 = arith.constant dense<0xFF800000> : vector<32xf32>
    %64 = vector.multi_reduction <maximumf>, %51, %cst_21 [1] : vector<32x128xf32> to vector<32xf32>
    %65 = vector.shape_cast %64 : vector<32xf32> to vector<32x1xf32>
    %66 = vector.broadcast %65 : vector<32x1xf32> to vector<32x128xf32>
    %67 = arith.subf %51, %66 : vector<32x128xf32>
    %68 = math.exp %67 : vector<32x128xf32>
    %cst_22 = arith.constant dense<0.000000e+00> : vector<32xf32>
    %69 = vector.multi_reduction <add>, %68, %cst_22 [1] : vector<32x128xf32> to vector<32xf32>
    %70 = vector.shape_cast %69 : vector<32xf32> to vector<32x1xf32>
    %71 = math.log %70 : vector<32x1xf32>
    %72 = arith.addf %65, %71 : vector<32x1xf32>
    %73 = arith.mulf %51, %53 : vector<32x128xf32>
    %cst_23 = arith.constant dense<0.000000e+00> : vector<32xf32>
    %74 = vector.multi_reduction <add>, %73, %cst_23 [1] : vector<32x128xf32> to vector<32xf32>
    %75 = vector.shape_cast %74 : vector<32xf32> to vector<32x1xf32>
    %76 = arith.mulf %72, %63 : vector<32x1xf32>
    %77 = arith.subf %76, %75 : vector<32x1xf32>
    %78 = vector.shape_cast %77 : vector<32x1xf32> to vector<1x32x1xf32>
    %cst_24 = arith.constant dense<0.000000e+00> : vector<1xf32>
    %79 = vector.multi_reduction <add>, %78, %cst_24 [1, 2] : vector<1x32x1xf32> to vector<1xf32>
    %80 = vector.shape_cast %79 : vector<1xf32> to vector<1x1x1xf32>
    %81 = vector.extract %80[0, 0, 0] : f32 from vector<1x1x1xf32>
    %82 = vector.broadcast %81 : f32 to vector<1x1xf32>
    %cst_25 = arith.constant 0.0909090936 : f32
    %83 = vector.broadcast %cst_25 : f32 to vector<1x1xf32>
    %84 = arith.mulf %82, %83 : vector<1x1xf32>
    %cst_26 = arith.constant 0.000000e+00 : f32
    %85 = vector.broadcast %cst_26 : f32 to vector<1x1xf32>
    %86 = arith.subf %85, %84 : vector<1x1xf32>
    %c0_27 = arith.constant 0 : index
    %c0_28 = arith.constant 0 : index
    %87 = vector.load %arg6[%c0_27, %c0_28] : memref<1x1xf32, #tpu.memory_space<vmem>>, vector<1x1xf32>
    tpu.vector_store %arg6[%c0_27, %c0_28], %86 {strides = array<i32>} : memref<1x1xf32, #tpu.memory_space<vmem>>, vector<1x1xf32>,
    return
  }
  func.func @transform_0(%arg0: i32, %arg1: memref<1xi32, #tpu.memory_space<smem>>) -> (i32, i32, i32) {
    %c0_i32 = arith.constant 0 : i32
    %c0_i32_0 = arith.constant 0 : i32
    %c0_i32_1 = arith.constant 0 : i32
    return %arg0, %c0_i32, %c0_i32_0 : i32, i32, i32
  }
  func.func @transform_1(%arg0: i32, %arg1: memref<1xi32, #tpu.memory_space<smem>>) -> (i32, i32, i32) {
    %0 = arith.index_cast %arg0 : i32 to index
    %1 = memref.load %arg1[%0] : memref<1xi32, #tpu.memory_space<smem>>
    %c0_i32 = arith.constant 0 : i32
    %c0_i32_0 = arith.constant 0 : i32
    %c0_i32_1 = arith.constant 0 : i32
    return %1, %c0_i32, %c0_i32_0 : i32, i32, i32
  }
  func.func @transform_2(%arg0: i32, %arg1: memref<1xi32, #tpu.memory_space<smem>>) -> (i32, i32) {
    %c0_i32 = arith.constant 0 : i32
    %c0_i32_0 = arith.constant 0 : i32
    %c0_i32_1 = arith.constant 0 : i32
    return %c0_i32, %c0_i32_0 : i32, i32
  }
  func.func @transform_3(%arg0: i32, %arg1: memref<1xi32, #tpu.memory_space<smem>>) -> (i32, i32) {
    %c0_i32 = arith.constant 0 : i32
    %c0_i32_0 = arith.constant 0 : i32
    %c0_i32_1 = arith.constant 0 : i32
    return %c0_i32, %c0_i32_0 : i32, i32
  }
  func.func @transform_4(%arg0: i32, %arg1: memref<1xi32, #tpu.memory_space<smem>>) -> (i32, i32) {
    %c0_i32 = arith.constant 0 : i32
    %c0_i32_0 = arith.constant 0 : i32
    return %arg0, %c0_i32 : i32, i32
  }
}

</mosaic_0001>

<bundles_post_ra>
// kernel: _forward_jit.1
= control target key start
LH: loop header
LB: loop body
LE: loop exit
PB: predicated region body
PF: predicated region fallthrough
CT: control target
= control target key end

     0   :  { %s1239_s0 = inlined_call_operand.<no memory space> [shape: s32[1], index: 0, kind: input, shape index: {}]   ;;  %s1240_s1 = inlined_call_operand.vmem [shape: bf16[1,32,128], index: 1, kind: input, shape index: {}]   ;;  %s1241_s2 = inlined_call_operand.vmem [shape: f32[3,64,128], index: 2, kind: input, shape index: {}]   ;;  %s1242_s3 = inlined_call_operand.vmem [shape: bf16[512,128], index: 3, kind: input, shape index: {}]   ;;  %s1243_s4 = inlined_call_operand.vmem [shape: f32[2,128], index: 4, kind: input, shape index: {}]   ;;  %s1244_s5 = inlined_call_operand.hbm [shape: f32[1,1], index: 5, kind: output, shape index: {}]  }
   0x1   :  { %v946_v0 = vld [vmem:[%s1242_s3 + $0x38] sm:$0xff]   ;;  %v947_v1 = vld [vmem:[%s1242_s3 + $0x30] sm:$0xff]   ;;  %v948_v2 = vld [vmem:[%s1242_s3 + $0x28] sm:$0xff]  }
   0x2   :  { %861 = vmatprep.subr.bf16.mxu0 %v946_v0  ;;  %v949_v3 = vld [vmem:[%s1242_s3 + $0x20] sm:$0xff]   ;;  %v956_v5 = vld [vmem:[%s1242_s3 + $0x78] sm:$0xff]   ;;  %v957_v6 = vld [vmem:[%s1242_s3 + $0x70] sm:$0xff]  }
   0x3   :  { %862 = vmatpush3.bf16.msra.mxu0 %v946_v0  ;;  %v954_v4 = vld [vmem:[%s1240_s1] sm:$0xff]   ;;  %v950_v7 = vld [vmem:[%s1242_s3 + $0x18] sm:$0xff]   ;;  %881 = vmatprep.subr.bf16.mxu1 %v956_v5  ;;  %v958_v8 = vld [vmem:[%s1242_s3 + $0x68] sm:$0xff]  }
   0x4   :  { %863 = vmatprep.subr.bf16.mxu0 %v947_v1  ;;  %877 = vmatprep.mubr.bf16.mxu0 %v954_v4  ;;  %v951_v9 = vld [vmem:[%s1242_s3 + $0x10] sm:$0xff]   ;;  %v959_v10 = vld [vmem:[%s1242_s3 + $0x60] sm:$0xff]   ;;  %v952_v11 = vld [vmem:[%s1242_s3 + $0x8] sm:$0xff]  }
   0x5   :  { %882 = vmatpush3.bf16.msra.mxu1 %v956_v5  ;;  %v960_v12 = vld [vmem:[%s1242_s3 + $0x58] sm:$0xff]   ;;  %v953_v13 = vld [vmem:[%s1242_s3] sm:$0xff]  }
   0x6   :  { %883 = vmatprep.subr.bf16.mxu1 %v957_v6 }
   0x7   :  { %864 = vmatpush3.bf16.msra.mxu0 %v947_v1 }
   0x8   :  { %865 = vmatprep.subr.bf16.mxu0 %v948_v2 }
   0x9   :  { %884 = vmatpush3.bf16.msra.mxu1 %v957_v6 }
   0xa   :  { %885 = vmatprep.subr.bf16.mxu1 %v958_v8 }
   0xb   :  { %866 = vmatpush3.bf16.msra.mxu0 %v948_v2 }
   0xc   :  { %867 = vmatprep.subr.bf16.mxu0 %v949_v3 }
   0xd   :  { %886 = vmatpush3.bf16.msra.mxu1 %v958_v8 }
   0xe   :  { %887 = vmatprep.subr.bf16.mxu1 %v959_v10 }
   0xf   :  { %868 = vmatpush3.bf16.msra.mxu0 %v949_v3 }
  0x10   :  { %869 = vmatprep.subr.bf16.mxu0 %v950_v7 }
  0x11   :  { %888 = vmatpush3.bf16.msra.mxu1 %v959_v10 }
  0x12   :  { %889 = vmatprep.subr.bf16.mxu1 %v960_v12 }
  0x13   :  { %870 = vmatpush3.bf16.msra.mxu0 %v950_v7 }
  0x14   :  { %871 = vmatprep.subr.bf16.mxu0 %v951_v9 }
  0x17   :  { %872 = vmatpush3.bf16.msra.mxu0 %v951_v9 }
  0x18   :  { %873 = vmatprep.subr.bf16.mxu0 %v952_v11 }
  0x1b   :  { %874 = vmatpush3.bf16.msra.mxu0 %v952_v11 }
  0x1c   :  { %875 = vmatprep.subr.bf16.mxu0 %v953_v13 }
  0x1d   :  { %11 = vsyncpa [#allocation5], 0  ;;  %890 = vmatpush3.bf16.msra.mxu1 %v960_v12  ;;  %v955_v14 = vld [vmem:[%s1240_s1 + $0x8] sm:$0xff]   ;;  %v961_v15 = vld [vmem:[%s1242_s3 + $0x50] sm:$0xff]   ;;  %v42_v18 = vlaneseq  ;;  %p34_p0 = scmp.lt.s32.totalorder %s1239_s0, 2  ;;  %v1042_v28 = vmov 0.0  }
  0x1e   :  { %891 = vmatprep.subr.bf16.mxu1 %v961_v15  ;;  %v962_v16 = vld [vmem:[%s1242_s3 + $0x48] sm:$0xff]   ;;  %v963_v17 = vld [vmem:[%s1242_s3 + $0x40] sm:$0xff]   ;;  %v964_v48 = vld [vmem:[%s1242_s3 + $0xb8] sm:$0xff]   ;;  %s1043_s26 = smov 64   ;;  %vm733_vm5 = vcmask 7168   ;;  %vm753_vm6 = vcmask 0  }
  0x1f   :  { %876 = vmatpush3.bf16.msra.mxu0 %v953_v13  ;;  %v1132_v19 = vshrl.u32 %v42_v18, 7  ;;  %s1246_s0 = smov (!%p34_p0, %s1239_s0), 2  ;;  %v1144_v22 = vld [vmem:[%s1243_s4] sm:$0x3]  ;;  %v965_v49 = vld [vmem:[%s1242_s3 + $0xb0] sm:$0xff]   ;;  %v966_v50 = vld [vmem:[%s1242_s3 + $0xa8] sm:$0xff]  }
  0x20   :  { %s820_s7 = sshll.u32 %s1246_s0, 6  ;;  %901 = vmatprep.subr.bf16.mxu0 %v964_v48  ;;  %v967_v51 = vld [vmem:[%s1242_s3 + $0xa0] sm:$0xff]   ;;  %v968_v52 = vld [vmem:[%s1242_s3 + $0x98] sm:$0xff]   ;;  %v969_v53 = vld [vmem:[%s1242_s3 + $0x90] sm:$0xff]  }
  0x21   :  { %892 = vmatpush3.bf16.msra.mxu1 %v961_v15  ;;  %v1138_v20 = vadd.s32 16, %v1132_v19  ;;  %v206_v21 = vsub.s32 0, %v1132_v19  ;;  %vm47_vm0 = vcmp.ge.s32.totalorder %v1132_v19, 4  ;;  %s1150_s12 = scalar_lea.vmem %s1241_s2, %s820_s7  ;;  %v970_v54 = vld [vmem:[%s1242_s3 + $0x88] sm:$0xff]   ;;  %v971_v55 = vld [vmem:[%s1242_s3 + $0x80] sm:$0xff]   ;;  %vm645_vm2 = vcmp.le.s32.totalorder %v1132_v19, 2 }
  0x22   :  { %878 = vmatmul.mubr.bf16.vlgmr.msra.gmra.mxu0 %v955_v14  ;;  %893 = vmatprep.subr.bf16.mxu1 %v962_v16  ;;  %v196_v26 = vld [vmem:[%s1150_s12] sm:$0xff]  ;;  %v199_v27 = vld [vmem:[%s1150_s12 + $0x18] sm:$0xff]  ;;  %v777_v29 = vsel %vm47_vm0, 1.0, %v1042_v28  ;;  %v198_v31 = vld [vmem:[%s1150_s12 + $0x10] sm:$0xff] }
  0x23   :  { %vm53_vm1 = vcmp.lt.s32.totalorder %v1138_v20, 20  ;;  %v207_v24 = vrot.slane %v1144_v22, %v206_v21  ;;  %v197_v34 = vld [vmem:[%s1150_s12 + $0x8] sm:$0xff]  ;;  %902 = vmatpush3.bf16.msra.mxu0 %v964_v48  ;;  %vm651_vm3 = vcmp.ge.s32.totalorder %v1138_v20, 19 }
  0x24   :  { %v778_v30 = vsel %vm53_vm1, 1.0, %v1042_v28  ;;  %903 = vmatprep.subr.bf16.mxu0 %v965_v49  ;;  %v978_v48 = vld [vmem:[%s1242_s3 + $0xc8] sm:$0xff]  }
  0x25   :  { %894 = vmatpush3.bf16.msra.mxu1 %v962_v16  ;;  %v211_v33 = vmul.f32 0.0, %v207_v24  ;;  %v208_v37 = vmul.f32 %v777_v29, %v207_v24  ;;  %v210_v39 = vmul.f32 %v778_v30, %v207_v24 }
  0x26   :  { %895 = vmatprep.subr.bf16.mxu1 %v963_v17 }
  0x27   :  { %904 = vmatpush3.bf16.msra.mxu0 %v965_v49  ;;  %v979_v49 = vld [vmem:[%s1242_s3 + $0xc0] sm:$0xff]  }
  0x28   :  { %905 = vmatprep.subr.bf16.mxu0 %v966_v50 }
  0x29   :  { %896 = vmatpush3.bf16.msra.mxu1 %v963_v17 }
  0x2b   :  { %906 = vmatpush3.bf16.msra.mxu0 %v966_v50 }
  0x2c   :  { %907 = vmatprep.subr.bf16.mxu0 %v967_v51 }
  0x2f   :  { %908 = vmatpush3.bf16.msra.mxu0 %v967_v51 }
  0x30   :  { %909 = vmatprep.subr.bf16.mxu0 %v968_v52 }
  0x33   :  { %910 = vmatpush3.bf16.msra.mxu0 %v968_v52 }
  0x34   :  { %911 = vmatprep.subr.bf16.mxu0 %v969_v53 }
  0x37   :  { %912 = vmatpush3.bf16.msra.mxu0 %v969_v53 }
  0x38   :  { %913 = vmatprep.subr.bf16.mxu0 %v970_v54 }
  0x3b   :  { %914 = vmatpush3.bf16.msra.mxu0 %v970_v54 }
  0x3c   :  { %915 = vmatprep.subr.bf16.mxu0 %v971_v55 }
  0x3f   :  { %916 = vmatpush3.bf16.msra.mxu0 %v971_v55 }
  0xe2   :  { %v879_v23 = vpop.f32.mrf.mxu0 }
  0xe3   :  { %v202_v38 = vadd.f32 %v879_v23, %v198_v31 }
  0xe4   :  { %v181_v25 = vpop.f32.mrf.mxu0 }
  0xe5   :  { %v200_v35 = vadd.f32 %v196_v26, %v181_v25  ;;  %v1166_v45 = vadd.f32 %v210_v39, %v202_v38 }
  0xe6   :  { %v880_v32 = vpop.f32.mrf.mxu0 }
  0xe7   :  { %v203_v36 = vadd.f32 %v880_v32, %v199_v27  ;;  %v1162_v43 = vadd.f32 %v208_v37, %v200_v35 }
  0xe8   :  { %v184_v40 = vpop.f32.mrf.mxu0 }
  0xe9   :  { %v201_v41 = vadd.f32 %v197_v34, %v184_v40  ;;  %v1160_v42 = vadd.f32 %v211_v33, %v203_v36 }
  0xeb   :  { %v1164_v44 = vadd.f32 %v207_v24, %v201_v41  ;;  %v217_v47 = vpack.c.bf16 %v1160_v42, %v1166_v45 }
  0xed   :  { %v216_v46 = vpack.c.bf16 %v1164_v44, %v1162_v43 }
  0xef   :  { %897 = vmatprep.mubr.bf16.mxu1 %v216_v46  ;;  %v976_v46 = vld [vmem:[%s1242_s3 + $0xd8] sm:$0xff]  }
  0xf0   :  { %898 = vmatmul.mubr.bf16.vlgmr.msra.gmra.mxu1 %v217_v47  ;;  %v977_v47 = vld [vmem:[%s1242_s3 + $0xd0] sm:$0xff]  }
 0x1b0   :  { %v899_v56 = vpop.f32.mrf.mxu1 }
 0x1b1   :  { %335 = vrot.lane.b32.xlu1 %v899_v56, %s1043_s26  ;;  %v799_v60 = vmul.f32 -1.442695, %v899_v56 }
 0x1b2   :  { %v316_v57 = vpop.f32.mrf.mxu1 }
 0x1b3   :  { %331 = vrot.lane.b32.xlu0 %v316_v57, %s1043_s26  ;;  %v797_v62 = vmul.f32 -1.442695, %v316_v57  ;;  %980 = vpow2.f32 %v799_v60 }
 0x1b4   :  { %v900_v58 = vpop.f32.mrf.mxu1 }
 0x1b5   :  { %337 = vrot.lane.b32.xlu1 %v900_v58, %s1043_s26  ;;  %v800_v61 = vmul.f32 -1.442695, %v900_v58 }
 0x1b6   :  { %v319_v59 = vpop.f32.mrf.mxu1 }
 0x1b7   :  { %333 = vrot.lane.b32.xlu0 %v319_v59, %s1043_s26  ;;  %v798_v63 = vmul.f32 -1.442695, %v319_v59  ;;  %982 = vpow2.f32 %v800_v61 }
 0x1b8   :  { %984 = vpow2.f32 %v797_v62  ;;  %v520_v62 = vsub.s32 1, %v1132_v19 }
 0x1b9   :  { %986 = vpow2.f32 %v798_v63 }
 0x1c0   :  { %v981_v0 = vpop.eup %980 }
 0x1c1   :  { %v353_v4 = vadd.f32 1.0, %v981_v0 }
 0x1c3   :  { %988 = vrcp.f32 %v353_v4 }
 0x1c4   :  { %v983_v1 = vpop.eup %982 }
 0x1c5   :  { %v985_v2 = vpop.eup %984  ;;  %v354_v5 = vadd.f32 1.0, %v983_v1 }
 0x1c6   :  { %v987_v3 = vpop.eup %986  ;;  %v351_v6 = vadd.f32 1.0, %v985_v2  ;;  %v521_v2 = vrot.slane %v1144_v22, %v520_v62 }
 0x1c7   :  { %v352_v7 = vadd.f32 1.0, %v987_v3  ;;  %990 = vrcp.f32 %v354_v5 }
 0x1c8   :  { %992 = vrcp.f32 %v351_v6 }
 0x1c9   :  { %994 = vrcp.f32 %v352_v7 }
 0x1d0   :  { %v989_v8 = vpop.eup %988 }
 0x1d1   :  { %v365_v14 = vmul.f32 %v989_v8, %v899_v56 }
 0x1d4   :  { %v991_v9 = vpop.eup %990 }
 0x1d5   :  { %v993_v11 = vpop.eup %992  ;;  %v366_v15 = vmul.f32 %v991_v9, %v900_v58 }
 0x1d6   :  { %v995_v12 = vpop.eup %994  ;;  %v363_v18 = vmul.f32 %v993_v11, %v316_v57 }
 0x1d7   :  { %v364_v23 = vmul.f32 %v995_v12, %v319_v59 }
 0x223   :  { %v336_v10 = vpop.permute.xlu1 %335 }
 0x224   :  { %v369_v17 = vmul.f32 %v365_v14, %v336_v10 }
 0x225   :  { %v332_v13 = vpop.permute.xlu0 %331 }
 0x226   :  { %v367_v25 = vmul.f32 %v363_v18, %v332_v13 }
 0x227   :  { %v338_v16 = vpop.permute.xlu1 %337 }
 0x228   :  { %v370_v21 = vmul.f32 %v366_v15, %v338_v16 }
 0x229   :  { %v334_v24 = vpop.permute.xlu0 %333 }
 0x22a   :  { %v372_v26 = vpack.c.bf16 %v370_v21, %v369_v17  ;;  %v368_v27 = vmul.f32 %v364_v23, %v334_v24 }
 0x22c   :  { %v371_v29 = vpack.c.bf16 %v368_v27, %v367_v25 }
 0x22e   :  { %917 = vmatprep.mubr.bf16.mxu0 %v371_v29 }
 0x22f   :  { %918 = vmatmul.mubr.bf16.vlgmr.msra.gmra.mxu0 %v372_v26 }
 0x2ef   :  { %v919_v30 = vpop.f32.mrf.mxu0 }
 0x2f0   :  { %v488_v34 = vadd.f32 %v919_v30, %v1166_v45  ;;  %v973_v45 = vld [vmem:[%s1242_s3 + $0xf0] sm:$0xff]  }
 0x2f1   :  { %v471_v31 = vpop.f32.mrf.mxu0 }
 0x2f2   :  { %v486_v32 = vadd.f32 %v471_v31, %v1162_v43  ;;  %v492_v39 = vmul.f32 %v488_v34, %v488_v34  ;;  %v972_v43 = vld [vmem:[%s1242_s3 + $0xf8] sm:$0xff]  }
 0x2f3   :  { %v920_v33 = vpop.f32.mrf.mxu0  ;;  %921 = vmatprep.subr.bf16.mxu1 %v972_v43 }
 0x2f4   :  { %v490_v35 = vmul.f32 %v486_v32, %v486_v32  ;;  %v489_v38 = vadd.f32 %v920_v33, %v1160_v42  ;;  %922 = vmatpush3.bf16.msra.mxu1 %v972_v43  ;;  %v974_v42 = vld [vmem:[%s1242_s3 + $0xe8] sm:$0xff]  }
 0x2f5   :  { %v474_v36 = vpop.f32.mrf.mxu0  ;;  %923 = vmatprep.subr.bf16.mxu1 %v973_v45 }
 0x2f6   :  { %v487_v37 = vadd.f32 %v474_v36, %v1164_v44  ;;  %494 = vadd.xlane.f32.xlu0 %v490_v35  ;;  %v493_v41 = vmul.f32 %v489_v38, %v489_v38  ;;  %v975_v44 = vld [vmem:[%s1242_s3 + $0xe0] sm:$0xff]  }
 0x2f7   :  { %v641_v35 = vld [vmem:[%s1150_s12 + $0x20] sm:$0xff] }
 0x2f8   :  { %v491_v40 = vmul.f32 %v487_v37, %v487_v37  ;;  %924 = vmatpush3.bf16.msra.mxu1 %v973_v45  ;;  %v644_v45 = vld [vmem:[%s1150_s12 + $0x38] sm:$0xff] }
 0x2f9   :  { %925 = vmatprep.subr.bf16.mxu1 %v974_v42 }
 0x2fa   :  { %498 = vadd.xlane.f32.xlu0 %v492_v39  ;;  %496 = vadd.xlane.f32.xlu1 %v491_v40  ;;  %v643_v39 = vld [vmem:[%s1150_s12 + $0x30] sm:$0xff]  ;;  %v642_v40 = vld [vmem:[%s1150_s12 + $0x28] sm:$0xff]  ;;  %s1044_s12 = smov [#allocation4]  }
 0x2fb   :  { %s761_s15 = sshll.u32 %s1044_s12, 4  ;;  %s762_s15 = int_to_ptr.vmem [resolvable:$true] %s761_s15 }
 0x2fc   :  { %926 = vmatpush3.bf16.msra.mxu1 %v974_v42  ;;  %s1020_s16 = scalar_lea.vmem %s762_s15, 16  ;;  %s1024_s17 = scalar_lea.vmem %s762_s15, 32 }
 0x2fd   :  { %927 = vmatprep.subr.bf16.mxu1 %v975_v44  ;;  %p1021_p1 = scmp.ne.s32.totalorder %s762_s15, %s1020_s16  ;;  %p1025_p2 = scmp.lt.s32.totalorder %s762_s15, %s762_s15 }
 0x2fe   :  { %500 = vadd.xlane.f32.xlu0 %v493_v41  ;;  %p1026_p3 = scmp.lt.s32.totalorder %s1024_s17, %s1020_s16 }
 0x300   :  { %928 = vmatpush3.bf16.msra.mxu1 %v975_v44  ;;  %p1027_p4 = por %p1026_p3, %p1025_p2 }
 0x301   :  { %929 = vmatprep.subr.bf16.mxu1 %v976_v46 }
 0x302   :  { %p1028_p5 = pnand %p1027_p4, %p1021_p1 }
 0x304   :  { %930 = vmatpush3.bf16.msra.mxu1 %v976_v46 }
 0x305   :  { %931 = vmatprep.subr.bf16.mxu1 %v977_v47 }
 0x308   :  { %932 = vmatpush3.bf16.msra.mxu1 %v977_v47 }
 0x309   :  { %933 = vmatprep.subr.bf16.mxu1 %v978_v48 }
 0x30c   :  { %934 = vmatpush3.bf16.msra.mxu1 %v978_v48 }
 0x30d   :  { %935 = vmatprep.subr.bf16.mxu1 %v979_v49 }
 0x310   :  { %936 = vmatpush3.bf16.msra.mxu1 %v979_v49 }
 0x37f   :  { %v495_v50 = vpop.xlane.xlu0 %494 }
 0x380   :  { %v502_v51 = vmul.f32 0.03125, %v495_v50 }
 0x382   :  { %v506_v52 = vadd.f32 1e-06, %v502_v51  ;;  %v817_v51 = vsel %vm645_vm2, 1.0, %v1042_v28 }
 0x383   :  { %v499_v53 = vpop.xlane.xlu0 %498  ;;  %v497_v54 = vpop.xlane.xlu1 %496 }
 0x384   :  { %v504_v55 = vmul.f32 0.03125, %v499_v53  ;;  %v503_v56 = vmul.f32 0.03125, %v497_v54  ;;  %996 = vrsqrt.f32 %v506_v52  ;;  %v46_v54 = vadd.s32 24, %v1132_v19 }
 0x386   :  { %v508_v57 = vadd.f32 1e-06, %v504_v55  ;;  %v507_v58 = vadd.f32 1e-06, %v503_v56  ;;  %vm656_vm4 = vcmp.le.s32.totalorder %v46_v54, 26 }
 0x387   :  { %v501_v59 = vpop.xlane.xlu0 %500  ;;  %v819_v19 = vsel %vm656_vm4, 1.0, %v1042_v28 }
 0x388   :  { %998 = vrsqrt.f32 %v508_v57  ;;  %v505_v60 = vmul.f32 0.03125, %v501_v59 }
 0x389   :  { %1000 = vrsqrt.f32 %v507_v58 }
 0x38a   :  { %v509_v61 = vadd.f32 1e-06, %v505_v60  ;;  %v818_v60 = vsel %vm651_vm3, 1.0, %v1042_v28 }
 0x38c   :  { %1002 = vrsqrt.f32 %v509_v61 }
 0x391   :  { %v997_v63 = vpop.eup %996 }
 0x392   :  { %v514_v1 = vmul.f32 %v997_v63, %v486_v32 }
 0x394   :  { %v522_v7 = vmul.f32 %v521_v2, %v514_v1 }
 0x395   :  { %v999_v0 = vpop.eup %998 }
 0x396   :  { %v1001_v3 = vpop.eup %1000  ;;  %v516_v5 = vmul.f32 %v999_v0, %v488_v34 }
 0x397   :  { %v515_v4 = vmul.f32 %v1001_v3, %v487_v37 }
 0x398   :  { %v524_v11 = vmul.f32 %v521_v2, %v516_v5 }
 0x399   :  { %v1003_v6 = vpop.eup %1002  ;;  %v523_v8 = vmul.f32 %v521_v2, %v515_v4 }
 0x39a   :  { %v517_v9 = vmul.f32 %v1003_v6, %v489_v38 }
 0x39b   :  { %v526_v10 = vpack.c.bf16 %v523_v8, %v522_v7 }
 0x39c   :  { %v525_v12 = vmul.f32 %v521_v2, %v517_v9 }
 0x39d   :  { %937 = vmatprep.mubr.bf16.mxu1 %v526_v10 }
 0x39e   :  { %v527_v13 = vpack.c.bf16 %v525_v12, %v524_v11 }
 0x3a0   :  { %938 = vmatmul.mubr.bf16.vlgmr.msra.gmra.mxu1 %v527_v13 }
 0x460   :  { %v939_v14 = vpop.f32.mrf.mxu1 }
 0x461   :  { %v715_v41 = vmul.f32 %v939_v14, %v643_v39 }
 0x462   :  { %v626_v15 = vpop.f32.mrf.mxu1 }
 0x463   :  { %673 = vmax.xlane.f32.xlu1 %v626_v15  ;;  %v713_v37 = vmul.f32 %v641_v35, %v626_v15 }
 0x464   :  { %v940_v16 = vpop.f32.mrf.mxu1 }
 0x465   :  { %v716_v42 = vmul.f32 %v940_v16, %v644_v45 }
 0x466   :  { %v629_v17 = vpop.f32.mrf.mxu1 }
 0x467   :  { %677 = vmax.xlane.f32.xlu1 %v939_v14  ;;  %675 = vmax.xlane.f32.xlu0 %v629_v17  ;;  %v714_v43 = vmul.f32 %v642_v40, %v629_v17 }
 0x46b   :  { %679 = vmax.xlane.f32.xlu0 %v940_v16 }
 0x4ec   :  { %v674_v22 = vpop.xlane.xlu1 %673 }
 0x4ed   :  { %v681_v18 = vsub.f32 %v626_v15, %v674_v22 }
 0x4ef   :  { %v685_v21 = vmul.f32 1.442695, %v681_v18 }
 0x4f0   :  { %v678_v23 = vpop.xlane.xlu1 %677  ;;  %v676_v24 = vpop.xlane.xlu0 %675 }
 0x4f1   :  { %1004 = vpow2.f32 %v685_v21  ;;  %v683_v25 = vsub.f32 %v939_v14, %v678_v23  ;;  %v682_v26 = vsub.f32 %v629_v17, %v676_v24 }
 0x4f3   :  { %v689_v27 = vmul.f32 1.442695, %v683_v25  ;;  %v687_v29 = vmul.f32 1.442695, %v682_v26 }
 0x4f4   :  { %v680_v30 = vpop.xlane.xlu0 %679 }
 0x4f5   :  { %1006 = vpow2.f32 %v689_v27  ;;  %v684_v31 = vsub.f32 %v940_v16, %v680_v30 }
 0x4f6   :  { %1008 = vpow2.f32 %v687_v29 }
 0x4f7   :  { %v691_v32 = vmul.f32 1.442695, %v684_v31 }
 0x4f9   :  { %1010 = vpow2.f32 %v691_v32 }
 0x4fe   :  { %v1005_v33 = vpop.eup %1004 }
 0x4ff   :  { %693 = vadd.xlane.f32.xlu1 %v1005_v33 }
 0x502   :  { %v1007_v34 = vpop.eup %1006 }
 0x503   :  { %v1009_v36 = vpop.eup %1008  ;;  %697 = vadd.xlane.f32.xlu1 %v1007_v34 }
 0x504   :  { %695 = vadd.xlane.f32.xlu0 %v1009_v36 }
 0x506   :  { %v1011_v38 = vpop.eup %1010 }
 0x507   :  { %717 = vadd.xlane.f32.xlu1 %v713_v37 }
 0x508   :  { %699 = vadd.xlane.f32.xlu0 %v1011_v38 }
 0x50b   :  { %721 = vadd.xlane.f32.xlu1 %v715_v41 }
 0x50c   :  { %719 = vadd.xlane.f32.xlu0 %v714_v43 }
 0x510   :  { %723 = vadd.xlane.f32.xlu0 %v716_v42 }
 0x588   :  { %v694_v44 = vpop.xlane.xlu1 %693 }
 0x589   :  { %1012 = vlog2.f32 %v694_v44 }
 0x58c   :  { %v698_v46 = vpop.xlane.xlu1 %697 }
 0x58d   :  { %1014 = vlog2.f32 %v698_v46  ;;  %v696_v47 = vpop.xlane.xlu0 %695 }
 0x58e   :  { %1016 = vlog2.f32 %v696_v47 }
 0x590   :  { %v718_v57 = vpop.xlane.xlu1 %717 }
 0x591   :  { %v700_v48 = vpop.xlane.xlu0 %699 }
 0x592   :  { %1018 = vlog2.f32 %v700_v48 }
 0x594   :  { %v722_v20 = vpop.xlane.xlu1 %721 }
 0x595   :  { %v720_v1 = vpop.xlane.xlu0 %719 }
 0x596   :  { %v1013_v49 = vpop.eup %1012 }
 0x597   :  { %v702_v50 = vmul.f32 0.6931472, %v1013_v49 }
 0x599   :  { %v709_v52 = vadd.f32 %v702_v50, %v674_v22  ;;  %v724_v12 = vpop.xlane.xlu0 %723 }
 0x59a   :  { %v1015_v53 = vpop.eup %1014 }
 0x59b   :  { %v1017_v55 = vpop.eup %1016  ;;  %v706_v56 = vmul.f32 0.6931472, %v1015_v53  ;;  %v725_v59 = vmul.f32 %v817_v51, %v709_v52 }
 0x59c   :  { %v704_v58 = vmul.f32 0.6931472, %v1017_v55 }
 0x59d   :  { %v711_v61 = vadd.f32 %v706_v56, %v678_v23  ;;  %v729_v2 = vsub.f32 %v725_v59, %v718_v57 }
 0x59e   :  { %v710_v62 = vadd.f32 %v704_v58, %v676_v24 }
 0x59f   :  { %v1019_v63 = vpop.eup %1018  ;;  %v727_v0 = vmul.f32 %v818_v60, %v711_v61  ;;  %v734_v8 = vsel %vm733_vm5, %v729_v2, 0.0 }
 0x5a0   :  { %v708_v3 = vmul.f32 0.6931472, %v1019_v63  ;;  %v726_v4 = vmul.f32 0.0, %v710_v62 }
 0x5a1   :  { %v731_v5 = vsub.f32 %v727_v0, %v722_v20 }
 0x5a2   :  { %v730_v6 = vsub.f32 %v726_v4, %v720_v1  ;;  %v712_v7 = vadd.f32 %v708_v3, %v680_v30 }
 0x5a3   :  { %v737_v13 = vsel %vm733_vm5, %v731_v5, 0.0 }
 0x5a4   :  { %v735_v9 = vsel %vm733_vm5, %v730_v6, 0.0  ;;  %v728_v10 = vmul.f32 %v819_v19, %v712_v7 }
 0x5a5   :  { %v736_v11 = vadd.f32 %v735_v9, %v734_v8 }
 0x5a6   :  { %v732_v14 = vsub.f32 %v728_v10, %v724_v12 }
 0x5a7   :  { %v738_v15 = vadd.f32 %v737_v13, %v736_v11 }
 0x5a8   :  { %v739_v16 = vsel %vm733_vm5, %v732_v14, 0.0 }
 0x5a9   :  { %v740_v17 = vadd.f32 %v739_v16, %v738_v15 }
 0x5ab   :  { %741 = vadd.xlane.f32.xlu1 %v740_v17 }
 0x634   :  { %v742_v22 = vpop.xlane.xlu1 %741 }
 0x635   :  { %v743_v18 = vrot.slane %v742_v22, 4 }
 0x637   :  { %v744_v21 = vadd.f32 %v743_v18, %v742_v22 }
 0x639   :  { %v745_v23 = vrot.slane %v744_v21, 2 }
 0x63b   :  { %v746_v24 = vadd.f32 %v745_v23, %v744_v21 }
 0x63d   :  { %v747_v28 = vrot.slane %v746_v24, 1 }
 0x63f   :  { %v748_v25 = vadd.f32 %v747_v28, %v746_v24 }
 0x641   :  { %941 = vpush %v748_v25 }
 0x672   :  { %s942_s3 = spop %941 }
 0x673   :  { %v750_v26 = vstv %s942_s3 }
 0x674   :  { %v751_v27 = vmul.f32 0.09090909, %v750_v26 }
 0x676   :  { %v752_v29 = vsub.f32 0.0, %v751_v27 }
 0x678   :  { %754 = vst.msk [vmem:[#allocation4] sm:$0x1] %vm753_vm6, %v752_v29 }
 0x679   :  { %1031 = shalt.err (!%p1028_p5)
}
 0x67a   :  { %764 = dma.vmem_to_hbm [thread:$0]  %s762_s15, 16, %s1244_s5, [#allocation5]  }
 0x67b   :  { %1040 = dma.done.wait [#allocation5], 16  }
 0x67c   :  { %1041 = vsyncadd [#allocation5], 4294967280 }
 0x67d   :  { %768 = vsyncpa [#allocation5], 1 }

</bundles_post_ra>
